<compile_context>
chip_gen: v7x
topology: tpu7x:2x2x1
jax: 0.10.0
libtpu: 0.0.40
codegen_flags: <defaults>
</compile_context>

<pallas_src>
import functools

import jax
import jax.numpy as jnp
from jax.experimental import pallas as pl
from jax.experimental.pallas import tpu as pltpu

_LANES = 128
_TARGET_BLOCK_BYTES = 1 << 20  # ~1 MiB per input block per pipeline buffer


def _partial_sq_diff_kernel(a_ref, b_ref, out_ref, *, rows, block_rows, need_mask):
    """Writes sum((a - b)^2) over this block (f32) into its own SMEM slot."""
    d = a_ref[...].astype(jnp.float32) - b_ref[...].astype(jnp.float32)
    dd = d * d
    if need_mask:
        # Last block may extend past the valid rows; mask out-of-range rows.
        i = pl.program_id(0)
        row_ids = i * block_rows + jax.lax.broadcasted_iota(jnp.int32, dd.shape, 0)
        dd = jnp.where(row_ids < rows, dd, 0.0)
    out_ref[0, 0] = jnp.sum(dd)


@jax.jit
def content_loss(orig_features, gen_features):
    """MSE(orig_features, gen_features) matching nn.MSELoss() (reduction='mean')."""
    assert orig_features.shape == gen_features.shape, "shape mismatch"
    assert orig_features.dtype == gen_features.dtype, "dtype mismatch"
    out_dtype = orig_features.dtype
    n_elems = orig_features.size

    a = orig_features.reshape(-1)  # keep native dtype (no extra HBM cast pass)
    b = gen_features.reshape(-1)

    itemsize = jnp.dtype(out_dtype).itemsize
    # min sublane tile: (8,128) f32, (16,128) bf16/f16, (32,128) int8/fp8
    row_mult = max(8, 32 // itemsize)
    min_tile = row_mult * _LANES
    main_elems = (n_elems // min_tile) * min_tile

    total = jnp.float32(0.0)

    if main_elems > 0:
        rows = main_elems // _LANES  # multiple of row_mult by construction
        target_rows = _TARGET_BLOCK_BYTES // (_LANES * itemsize)
        target_rows = max(row_mult, (target_rows // row_mult) * row_mult)
        block_rows = min(target_rows, rows)  # multiple of row_mult either way
        num_blocks = pl.cdiv(rows, block_rows)
        need_mask = (rows % block_rows) != 0

        a2 = a[:main_elems].reshape(rows, _LANES)
        b2 = b[:main_elems].reshape(rows, _LANES)

        kernel = functools.partial(
            _partial_sq_diff_kernel,
            rows=rows,
            block_rows=block_rows,
            need_mask=need_mask,
        )

        partials = pl.pallas_call(
            kernel,
            out_shape=jax.ShapeDtypeStruct((num_blocks, 1), jnp.float32),
            grid=(num_blocks,),
            in_specs=[
                pl.BlockSpec((block_rows, _LANES), lambda i: (i, 0)),
                pl.BlockSpec((block_rows, _LANES), lambda i: (i, 0)),
            ],
            out_specs=pl.BlockSpec(
                (1, 1), lambda i: (i, 0), memory_space=pltpu.SMEM
            ),
            compiler_params=pltpu.CompilerParams(
                dimension_semantics=("parallel",)
            ),
        )(a2, b2)
        total = total + jnp.sum(partials)

    if main_elems < n_elems:
        # <1 minimum-tile remainder: negligible bytes, do it in plain JAX
        # instead of re-materializing both full arrays with jnp.pad.
        ta = a[main_elems:].astype(jnp.float32)
        tb = b[main_elems:].astype(jnp.float32)
        td = ta - tb
        total = total + jnp.sum(td * td)

    return (total / jnp.float32(n_elems)).astype(out_dtype)


class ContentLoss:
    """Mirror of the PyTorch module: criterion = nn.MSELoss() (no params)."""

    def __init__(self, content_weight):
        # content_weight is stored but unused in the PyTorch forward as well.
        self.content_weight = content_weight

    def __call__(self, orig_features, gen_features):
        return content_loss(orig_features, gen_features)


if __name__ == "__main__":
    key = jax.random.PRNGKey(0)
    k1, k2, k3, k4 = jax.random.split(key, 4)

    loss_mod = ContentLoss(content_weight=1.0)

    # Case 1: NCHW feature maps, exact tile multiple (2*4*16*16 = 2048 elems).
    orig = jax.random.normal(k1, (2, 4, 16, 16), dtype=jnp.float32)
    gen = jax.random.normal(k2, (2, 4, 16, 16), dtype=jnp.float32)
    out = jax.block_until_ready(loss_mod(orig, gen))
    ref = jnp.mean((orig - gen) ** 2)
    assert jnp.allclose(out, ref, rtol=1e-5, atol=1e-6), (out, ref)

    # Case 2: ragged size (kernel prefix + plain-JAX tail): 1*4*24*16 = 1536.
    orig2 = jax.random.normal(k3, (1, 4, 24, 16), dtype=jnp.float32)
    gen2 = jax.random.normal(k4, (1, 4, 24, 16), dtype=jnp.float32)
    out2 = jax.block_until_ready(loss_mod(orig2, gen2))
    ref2 = jnp.mean((orig2 - gen2) ** 2)
    assert jnp.allclose(out2, ref2, rtol=1e-5, atol=1e-6), (out2, ref2)

    print("KERNEL_OK")
</pallas_src>

<mosaic_0001>
module attributes {stable_mosaic.version = 11 : i64} {
  func.func @_partial_sq_diff_kernel(%arg0: i32, %arg1: memref<16x128xf32, #tpu.memory_space<vmem>>, %arg2: memref<16x128xf32, #tpu.memory_space<vmem>>, %arg3: memref<1x1xf32, #tpu.memory_space<smem>>) attributes {dimension_semantics = [#tpu.dimension_semantics<parallel>], iteration_bounds = array<i64: 1>, scalar_prefetch = 0 : i64, scratch_operands = 0 : i64, tpu.core_type = #tpu.core_type<tc>, window_params = [{transform_indices = @transform_0, window_bounds = array<i64: 16, 128>}, {transform_indices = @transform_1, window_bounds = array<i64: 16, 128>}, {transform_indices = @transform_2, window_bounds = array<i64: 1, 1>}]} {
    %c0 = arith.constant 0 : index
    %c0_0 = arith.constant 0 : index
    %0 = vector.load %arg1[%c0, %c0_0] : memref<16x128xf32, #tpu.memory_space<vmem>>, vector<16x128xf32>
    %c0_1 = arith.constant 0 : index
    %c0_2 = arith.constant 0 : index
    %1 = vector.load %arg2[%c0_1, %c0_2] : memref<16x128xf32, #tpu.memory_space<vmem>>, vector<16x128xf32>
    %2 = arith.subf %0, %1 : vector<16x128xf32>
    %3 = arith.mulf %2, %2 : vector<16x128xf32>
    %4 = vector.shape_cast %3 : vector<16x128xf32> to vector<1x16x128xf32>
    %cst = arith.constant dense<0.000000e+00> : vector<1xf32>
    %5 = vector.multi_reduction <add>, %4, %cst [1, 2] : vector<1x16x128xf32> to vector<1xf32>
    %6 = vector.shape_cast %5 : vector<1xf32> to vector<1x1x1xf32>
    %7 = vector.extract %6[0, 0, 0] : f32 from vector<1x1x1xf32>
    %c0_3 = arith.constant 0 : index
    %c0_4 = arith.constant 0 : index
    %8 = memref.load %arg3[%c0_3, %c0_4] : memref<1x1xf32, #tpu.memory_space<smem>>
    memref.store %7, %arg3[%c0_3, %c0_4] : memref<1x1xf32, #tpu.memory_space<smem>>
    return
  }
  func.func @transform_0(%arg0: i32) -> (i32, i32) {
    %c0_i32 = arith.constant 0 : i32
    %c0_i32_0 = arith.constant 0 : i32
    return %arg0, %c0_i32 : i32, i32
  }
  func.func @transform_1(%arg0: i32) -> (i32, i32) {
    %c0_i32 = arith.constant 0 : i32
    %c0_i32_0 = arith.constant 0 : i32
    return %arg0, %c0_i32 : i32, i32
  }
  func.func @transform_2(%arg0: i32) -> (i32, i32) {
    %c0_i32 = arith.constant 0 : i32
    %c0_i32_0 = arith.constant 0 : i32
    return %arg0, %c0_i32 : i32, i32
  }
}

</mosaic_0001>

<bundles_post_ra>
// kernel: content_loss.1
= control target key start
LH: loop header
LB: loop body
LE: loop exit
PB: predicated region body
PF: predicated region fallthrough
CT: control target
= control target key end

     0   :  { %s100_s0 = inlined_call_operand.vmem [shape: f32[16,128], index: 0, kind: input, shape index: {}]   ;;  %s101_s1 = inlined_call_operand.vmem [shape: f32[16,128], index: 1, kind: input, shape index: {}]   ;;  %s102_s2 = inlined_call_operand.hbm [shape: f32[1,1], index: 2, kind: output, shape index: {}]  }
   0x1   :  { %v12_v0 = vld [vmem:[%s100_s0] sm:$0xff]  ;;  %v13_v1 = vld [vmem:[%s100_s0 + $0x8] sm:$0xff] }
   0x2   :  { %v14_v2 = vld [vmem:[%s101_s1] sm:$0xff]  ;;  %v15_v3 = vld [vmem:[%s101_s1 + $0x8] sm:$0xff] }
   0x3   :  { %v16_v4 = vsub.f32 %v12_v0, %v14_v2 }
   0x4   :  { %7 = vsyncpa [#allocation3], 0  ;;  %v17_v5 = vsub.f32 %v13_v1, %v15_v3  ;;  %s48_s1 = scalar_lea.hbm %s102_s2, 16 }
   0x5   :  { %v18_v6 = vmul.f32 %v16_v4, %v16_v4  ;;  %p49_p0 = scmp.ne.s32.totalorder %s102_s2, %s48_s1  ;;  %p52_p1 = scmp.lt.u32.totalorder %s48_s1, %s102_s2 }
   0x6   :  { %v19_v7 = vmul.f32 %v17_v5, %v17_v5 }
   0x7   :  { %p54_p2 = pnand %p52_p1, %p49_p0 }
   0x8   :  { %v20_v8 = vadd.f32 %v19_v7, %v18_v6 }
   0xa   :  { %21 = vadd.xlane.f32.xlu0 %v20_v8 }
  0x97   :  { %v22_v9 = vpop.xlane.xlu0 %21 }
  0x98   :  { %v23_v10 = vrot.slane %v22_v9, 4 }
  0x9a   :  { %v24_v11 = vadd.f32 %v23_v10, %v22_v9 }
  0x9c   :  { %v25_v12 = vrot.slane %v24_v11, 2 }
  0x9e   :  { %v26_v13 = vadd.f32 %v25_v12, %v24_v11 }
  0xa0   :  { %v27_v14 = vrot.slane %v26_v13, 1 }
  0xa2   :  { %v28_v15 = vadd.f32 %v27_v14, %v26_v13 }
  0xa4   :  { %45 = vpush %v28_v15 }
  0xd5   :  { %s46_s0 = spop %45 }
  0xd6   :  { %31 = sst [smem:[#allocation2]] %s46_s0 }
  0xd7   :  { %57 = shalt.err (!%p54_p2)
}
  0xd8   :  { %s60_s23 = smov [#allocation2]  }
  0xd9   :  { %39 = dma.smem_to_hbm %s60_s23, 16, %s102_s2, [#allocation3]  }
  0xda   :  { %58 = dma.done.wait [#allocation3], 16  }
  0xdb   :  { %59 = vsyncadd [#allocation3], 4294967280 }
  0xdc   :  { %43 = sfence }
  0xdd   :  { %44 = vsyncpa [#allocation3], 1 }

</bundles_post_ra>
